<compile_context>
chip_gen: v5e
topology: v5e:2x2
jax: 0.10.0
libtpu: 0.0.40
codegen_flags: <defaults>
</compile_context>

<pallas_src>
import functools

import jax
import jax.numpy as jnp
from jax.experimental import pallas as pl
from jax.experimental.pallas import tpu as pltpu

KERNEL_SIZE = 11
PAD = KERNEL_SIZE // 2


def _fast_pow(x, p):
    """x ** p via exact repeated multiplies when p is a small non-neg integer."""
    pi = int(p)
    if float(pi) != float(p) or pi < 0 or pi > 16:
        return jnp.power(x, p)            # fallback (EUP exp/log)
    if pi == 0:
        return jnp.ones_like(x)
    acc, base, n = None, x, pi
    while n:
        if n & 1:
            acc = base if acc is None else acc * base
        n >>= 1
        if n:
            base = base * base
    return acc


def _focal_kernel(lab_ref, out_ref, sum_ref, cnt_ref, pad_ref, *, alfa, beta, eps):
    TB, H, W = lab_ref.shape
    lab_f = lab_ref[...].astype(jnp.float32)          # (TB, H, W), values {0,1}
    out = out_ref[...]                                # (TB, H, W) f32 predictions

    # ---- zero-padded label tile (border=0; exact stand-in for -inf pad since
    # labels are non-negative: the window always contains its own center) ------
    pad_ref[...] = jnp.zeros(pad_ref.shape, jnp.float32)
    pad_ref[:, PAD:PAD + H, PAD:PAD + W] = lab_f
    p = pad_ref[...]                                  # (TB, H+10, W+10)

    # ---- separable 11x11 stride-1 max pool, log-doubled (4 maxes per axis) ---
    # rows (sublane axis): forward window max, width 2 -> 4 -> 8 -> 11
    m = jnp.maximum(p[:, :-1, :], p[:, 1:, :])
    m = jnp.maximum(m[:, :-2, :], m[:, 2:, :])
    m = jnp.maximum(m[:, :-4, :], m[:, 4:, :])
    m = jnp.maximum(m[:, :H, :], m[:, 3:3 + H, :])    # (TB, H, W+10)
    # cols (lane axis)
    c = jnp.maximum(m[:, :, :-1], m[:, :, 1:])
    c = jnp.maximum(c[:, :, :-2], c[:, :, 2:])
    c = jnp.maximum(c[:, :, :-4], c[:, :, 4:])
    pooled = jnp.maximum(c[:, :, :W], c[:, :, 3:3 + W])   # (TB, H, W), values {0,1}

    # ---- hard-negative ring mask + focal background term ---------------------
    enlarged = pooled.astype(jnp.int32) - lab_f.astype(jnp.int32)
    mask = enlarged == 1

    term = (_fast_pow(1.0 - lab_f, beta)              # ==1 on the ring (lab==0)
            * _fast_pow(out, alfa)                    # alfa=2 -> out*out
            * jnp.log(1.0 - out + eps))               # single EUP op per element

    msum = jnp.sum(jnp.where(mask, term, jnp.float32(0.0)))
    cnt = jnp.sum(mask.astype(jnp.float32))

    # per-block partials (lane-dense full-block stores; wrapper reads [.,0,0])
    sum_ref[...] = jnp.full(sum_ref.shape, msum, jnp.float32)
    cnt_ref[...] = jnp.full(cnt_ref.shape, cnt, jnp.float32)


def _pick_tb(B, H, W):
    """Largest divisor of B that keeps the f32 tile ~<=1 MiB and leaves >=2 grid
    steps when possible (so both v7x TensorCores get work)."""
    cap = max(1, (1 << 20) // max(1, H * W * 4))
    cap = min(cap, max(1, B // 2))
    tb = 1
    for d in range(1, B + 1):
        if B % d == 0 and d <= cap:
            tb = d
    return tb


def hard_negative_focal_loss(labels, output, alfa=2.0, beta=4.0, eps=1e-05):
    """labels: NCHW binary (0/1) map, output: float NCHW predictions in (0,1)."""
    N, C, H, W = labels.shape
    B = N * C

    lab = labels.reshape(B, H, W).astype(jnp.bfloat16)   # 0/1 exact in bf16
    out = output.reshape(B, H, W).astype(jnp.float32)

    TB = _pick_tb(B, H, W)
    G = B // TB

    kernel = functools.partial(_focal_kernel, alfa=float(alfa),
                               beta=float(beta), eps=float(eps))

    psum, pcnt = pl.pallas_call(
        kernel,
        grid=(G,),
        in_specs=[
            pl.BlockSpec((TB, H, W), lambda b: (b, 0, 0)),   # labels (bf16)
            pl.BlockSpec((TB, H, W), lambda b: (b, 0, 0)),   # predictions (f32)
        ],
        out_specs=[
            pl.BlockSpec((1, 8, 128), lambda b: (b, 0, 0)),  # partial sums
            pl.BlockSpec((1, 8, 128), lambda b: (b, 0, 0)),  # partial counts
        ],
        out_shape=[
            jax.ShapeDtypeStruct((G, 8, 128), jnp.float32),
            jax.ShapeDtypeStruct((G, 8, 128), jnp.float32),
        ],
        scratch_shapes=[pltpu.VMEM((TB, H + 2 * PAD, W + 2 * PAD), jnp.float32)],
        compiler_params=pltpu.CompilerParams(
            dimension_semantics=("parallel",),
            vmem_limit_bytes=32 * 1024 * 1024,
        ),
    )(lab, out)

    total_sum = jnp.sum(psum[:, 0, 0])
    total_cnt = jnp.sum(pcnt[:, 0, 0])
    # Masked mean; empty selection -> 0/0 = NaN, matching torch.mean of an
    # empty tensor (documented, not guarded).
    return -(total_sum / total_cnt)


def _reference(labels, output, alfa=2.0, beta=4.0, eps=1e-05):
    """Pure-JAX reference mirroring the PyTorch forward."""
    lab_f = labels.astype(jnp.float32)
    pooled = jax.lax.reduce_window(
        lab_f, -jnp.inf, jax.lax.max,
        (1, 1, KERNEL_SIZE, KERNEL_SIZE), (1, 1, 1, 1),
        [(0, 0), (0, 0), (PAD, PAD), (PAD, PAD)])
    enlarged = pooled.astype(jnp.int32) - labels
    mask = enlarged == 1
    term = ((1.0 - lab_f) ** beta * output.astype(jnp.float32) ** alfa
            * jnp.log(1.0 - output.astype(jnp.float32) + eps))
    return -(jnp.sum(jnp.where(mask, term, 0.0)) / jnp.sum(mask))


if __name__ == "__main__":
    key = jax.random.PRNGKey(0)
    k1, k2 = jax.random.split(key)

    N, C, H, W = 2, 4, 16, 16
    # sparse binary label map (a few positive "keypoints")
    labels = (jax.random.uniform(k1, (N, C, H, W)) < 0.03).astype(jnp.int32)
    # predictions in (0, 1), like post-sigmoid heatmap scores
    output = jax.nn.sigmoid(jax.random.normal(k2, (N, C, H, W), jnp.float32))

    loss = jax.block_until_ready(hard_negative_focal_loss(labels, output))
    ref = _reference(labels, output)
    assert jnp.allclose(loss, ref, rtol=1e-4, atol=1e-5), (loss, ref)
    print("KERNEL_OK")
</pallas_src>

<mosaic_0001>
module attributes {stable_mosaic.version = 11 : i64} {
  func.func @_focal_kernel(%arg0: i32, %arg1: memref<4x16x16xbf16, #tpu.memory_space<vmem>>, %arg2: memref<4x16x16xf32, #tpu.memory_space<vmem>>, %arg3: memref<1x8x128xf32, #tpu.memory_space<vmem>>, %arg4: memref<1x8x128xf32, #tpu.memory_space<vmem>>, %arg5: memref<4x26x26xf32, #tpu.memory_space<vmem>>) attributes {dimension_semantics = [#tpu.dimension_semantics<parallel>], iteration_bounds = array<i64: 2>, scalar_prefetch = 0 : i64, scratch_operands = 1 : i64, tpu.core_type = #tpu.core_type<tc>, window_params = [{transform_indices = @transform_0, window_bounds = array<i64: 4, 16, 16>}, {transform_indices = @transform_1, window_bounds = array<i64: 4, 16, 16>}, {transform_indices = @transform_2, window_bounds = array<i64: 1, 8, 128>}, {transform_indices = @transform_3, window_bounds = array<i64: 1, 8, 128>}]} {
    %c0 = arith.constant 0 : index
    %c0_0 = arith.constant 0 : index
    %c0_1 = arith.constant 0 : index
    %0 = vector.load %arg1[%c0, %c0_0, %c0_1] : memref<4x16x16xbf16, #tpu.memory_space<vmem>>, vector<4x16x16xbf16>
    %1 = arith.extf %0 : vector<4x16x16xbf16> to vector<4x16x16xf32>
    %c0_2 = arith.constant 0 : index
    %c0_3 = arith.constant 0 : index
    %c0_4 = arith.constant 0 : index
    %2 = vector.load %arg2[%c0_2, %c0_3, %c0_4] : memref<4x16x16xf32, #tpu.memory_space<vmem>>, vector<4x16x16xf32>
    %cst = arith.constant 0.000000e+00 : f32
    %3 = vector.broadcast %cst : f32 to vector<4x26x26xf32>
    %c0_5 = arith.constant 0 : index
    %c0_6 = arith.constant 0 : index
    %c0_7 = arith.constant 0 : index
    %4 = vector.load %arg5[%c0_5, %c0_6, %c0_7] : memref<4x26x26xf32, #tpu.memory_space<vmem>>, vector<4x26x26xf32>
    tpu.vector_store %arg5[%c0_5, %c0_6, %c0_7], %3 {strides = array<i32>} : memref<4x26x26xf32, #tpu.memory_space<vmem>>, vector<4x26x26xf32>,
    %c0_8 = arith.constant 0 : index
    %c5 = arith.constant 5 : index
    %c5_9 = arith.constant 5 : index
    %5 = vector.load %arg5[%c0_8, %c5, %c5_9] : memref<4x26x26xf32, #tpu.memory_space<vmem>>, vector<4x16x16xf32>
    tpu.vector_store %arg5[%c0_8, %c5, %c5_9], %1 {strides = array<i32>} : memref<4x26x26xf32, #tpu.memory_space<vmem>>, vector<4x16x16xf32>,
    %c0_10 = arith.constant 0 : index
    %c0_11 = arith.constant 0 : index
    %c0_12 = arith.constant 0 : index
    %6 = vector.load %arg5[%c0_10, %c0_11, %c0_12] : memref<4x26x26xf32, #tpu.memory_space<vmem>>, vector<4x26x26xf32>
    %7 = vector.extract_strided_slice %6 {offsets = [0, 0, 0], sizes = [4, 25, 26], strides = [1, 1, 1]} : vector<4x26x26xf32> to vector<4x25x26xf32>
    %8 = vector.extract_strided_slice %6 {offsets = [0, 1, 0], sizes = [4, 25, 26], strides = [1, 1, 1]} : vector<4x26x26xf32> to vector<4x25x26xf32>
    %9 = arith.maximumf %7, %8 : vector<4x25x26xf32>
    %10 = vector.extract_strided_slice %9 {offsets = [0, 0, 0], sizes = [4, 23, 26], strides = [1, 1, 1]} : vector<4x25x26xf32> to vector<4x23x26xf32>
    %11 = vector.extract_strided_slice %9 {offsets = [0, 2, 0], sizes = [4, 23, 26], strides = [1, 1, 1]} : vector<4x25x26xf32> to vector<4x23x26xf32>
    %12 = arith.maximumf %10, %11 : vector<4x23x26xf32>
    %13 = vector.extract_strided_slice %12 {offsets = [0, 0, 0], sizes = [4, 19, 26], strides = [1, 1, 1]} : vector<4x23x26xf32> to vector<4x19x26xf32>
    %14 = vector.extract_strided_slice %12 {offsets = [0, 4, 0], sizes = [4, 19, 26], strides = [1, 1, 1]} : vector<4x23x26xf32> to vector<4x19x26xf32>
    %15 = arith.maximumf %13, %14 : vector<4x19x26xf32>
    %16 = vector.extract_strided_slice %15 {offsets = [0, 0, 0], sizes = [4, 16, 26], strides = [1, 1, 1]} : vector<4x19x26xf32> to vector<4x16x26xf32>
    %17 = vector.extract_strided_slice %15 {offsets = [0, 3, 0], sizes = [4, 16, 26], strides = [1, 1, 1]} : vector<4x19x26xf32> to vector<4x16x26xf32>
    %18 = arith.maximumf %16, %17 : vector<4x16x26xf32>
    %19 = vector.extract_strided_slice %18 {offsets = [0, 0, 0], sizes = [4, 16, 25], strides = [1, 1, 1]} : vector<4x16x26xf32> to vector<4x16x25xf32>
    %20 = vector.extract_strided_slice %18 {offsets = [0, 0, 1], sizes = [4, 16, 25], strides = [1, 1, 1]} : vector<4x16x26xf32> to vector<4x16x25xf32>
    %21 = arith.maximumf %19, %20 : vector<4x16x25xf32>
    %22 = vector.extract_strided_slice %21 {offsets = [0, 0, 0], sizes = [4, 16, 23], strides = [1, 1, 1]} : vector<4x16x25xf32> to vector<4x16x23xf32>
    %23 = vector.extract_strided_slice %21 {offsets = [0, 0, 2], sizes = [4, 16, 23], strides = [1, 1, 1]} : vector<4x16x25xf32> to vector<4x16x23xf32>
    %24 = arith.maximumf %22, %23 : vector<4x16x23xf32>
    %25 = vector.extract_strided_slice %24 {offsets = [0, 0, 0], sizes = [4, 16, 19], strides = [1, 1, 1]} : vector<4x16x23xf32> to vector<4x16x19xf32>
    %26 = vector.extract_strided_slice %24 {offsets = [0, 0, 4], sizes = [4, 16, 19], strides = [1, 1, 1]} : vector<4x16x23xf32> to vector<4x16x19xf32>
    %27 = arith.maximumf %25, %26 : vector<4x16x19xf32>
    %28 = vector.extract_strided_slice %27 {offsets = [0, 0, 0], sizes = [4, 16, 16], strides = [1, 1, 1]} : vector<4x16x19xf32> to vector<4x16x16xf32>
    %29 = vector.extract_strided_slice %27 {offsets = [0, 0, 3], sizes = [4, 16, 16], strides = [1, 1, 1]} : vector<4x16x19xf32> to vector<4x16x16xf32>
    %30 = arith.maximumf %28, %29 : vector<4x16x16xf32>
    %31 = arith.fptosi %30 : vector<4x16x16xf32> to vector<4x16x16xi32>
    %32 = arith.fptosi %1 : vector<4x16x16xf32> to vector<4x16x16xi32>
    %33 = arith.subi %31, %32 : vector<4x16x16xi32>
    %c1_i32 = arith.constant 1 : i32
    %34 = vector.broadcast %c1_i32 : i32 to vector<4x16x16xi32>
    %35 = arith.cmpi eq, %33, %34 : vector<4x16x16xi32>
    %cst_13 = arith.constant 1.000000e+00 : f32
    %36 = vector.broadcast %cst_13 : f32 to vector<4x16x16xf32>
    %37 = arith.subf %36, %1 : vector<4x16x16xf32>
    %38 = arith.mulf %37, %37 : vector<4x16x16xf32>
    %39 = arith.mulf %38, %38 : vector<4x16x16xf32>
    %40 = arith.mulf %2, %2 : vector<4x16x16xf32>
    %41 = arith.mulf %39, %40 : vector<4x16x16xf32>
    %cst_14 = arith.constant 1.000000e+00 : f32
    %42 = vector.broadcast %cst_14 : f32 to vector<4x16x16xf32>
    %43 = arith.subf %42, %2 : vector<4x16x16xf32>
    %cst_15 = arith.constant 9.99999974E-6 : f32
    %44 = vector.broadcast %cst_15 : f32 to vector<4x16x16xf32>
    %45 = arith.addf %43, %44 : vector<4x16x16xf32>
    %46 = math.log %45 : vector<4x16x16xf32>
    %47 = arith.mulf %41, %46 : vector<4x16x16xf32>
    %cst_16 = arith.constant 0.000000e+00 : f32
    %48 = vector.broadcast %cst_16 : f32 to vector<4x16x16xf32>
    %49 = arith.select %35, %47, %48 : vector<4x16x16xi1>, vector<4x16x16xf32>
    %50 = vector.shape_cast %49 : vector<4x16x16xf32> to vector<1x4x16x16xf32>
    %cst_17 = arith.constant dense<0.000000e+00> : vector<1xf32>
    %51 = vector.multi_reduction <add>, %50, %cst_17 [1, 2, 3] : vector<1x4x16x16xf32> to vector<1xf32>
    %52 = vector.shape_cast %51 : vector<1xf32> to vector<1x1x1x1xf32>
    %53 = vector.extract %52[0, 0, 0, 0] : f32 from vector<1x1x1x1xf32>
    %54 = arith.extui %35 : vector<4x16x16xi1> to vector<4x16x16xi32>
    %55 = arith.sitofp %54 : vector<4x16x16xi32> to vector<4x16x16xf32>
    %56 = vector.shape_cast %55 : vector<4x16x16xf32> to vector<1x4x16x16xf32>
    %cst_18 = arith.constant dense<0.000000e+00> : vector<1xf32>
    %57 = vector.multi_reduction <add>, %56, %cst_18 [1, 2, 3] : vector<1x4x16x16xf32> to vector<1xf32>
    %58 = vector.shape_cast %57 : vector<1xf32> to vector<1x1x1x1xf32>
    %59 = vector.extract %58[0, 0, 0, 0] : f32 from vector<1x1x1x1xf32>
    %60 = vector.broadcast %53 : f32 to vector<1x8x128xf32>
    %c0_19 = arith.constant 0 : index
    %c0_20 = arith.constant 0 : index
    %c0_21 = arith.constant 0 : index
    %61 = vector.load %arg3[%c0_19, %c0_20, %c0_21] : memref<1x8x128xf32, #tpu.memory_space<vmem>>, vector<1x8x128xf32>
    tpu.vector_store %arg3[%c0_19, %c0_20, %c0_21], %60 {strides = array<i32>} : memref<1x8x128xf32, #tpu.memory_space<vmem>>, vector<1x8x128xf32>,
    %62 = vector.broadcast %59 : f32 to vector<1x8x128xf32>
    %c0_22 = arith.constant 0 : index
    %c0_23 = arith.constant 0 : index
    %c0_24 = arith.constant 0 : index
    %63 = vector.load %arg4[%c0_22, %c0_23, %c0_24] : memref<1x8x128xf32, #tpu.memory_space<vmem>>, vector<1x8x128xf32>
    tpu.vector_store %arg4[%c0_22, %c0_23, %c0_24], %62 {strides = array<i32>} : memref<1x8x128xf32, #tpu.memory_space<vmem>>, vector<1x8x128xf32>,
    return
  }
  func.func @transform_0(%arg0: i32) -> (i32, i32, i32) {
    %c0_i32 = arith.constant 0 : i32
    %c0_i32_0 = arith.constant 0 : i32
    %c0_i32_1 = arith.constant 0 : i32
    return %arg0, %c0_i32, %c0_i32_0 : i32, i32, i32
  }
  func.func @transform_1(%arg0: i32) -> (i32, i32, i32) {
    %c0_i32 = arith.constant 0 : i32
    %c0_i32_0 = arith.constant 0 : i32
    %c0_i32_1 = arith.constant 0 : i32
    return %arg0, %c0_i32, %c0_i32_0 : i32, i32, i32
  }
  func.func @transform_2(%arg0: i32) -> (i32, i32, i32) {
    %c0_i32 = arith.constant 0 : i32
    %c0_i32_0 = arith.constant 0 : i32
    %c0_i32_1 = arith.constant 0 : i32
    return %arg0, %c0_i32, %c0_i32_0 : i32, i32, i32
  }
  func.func @transform_3(%arg0: i32) -> (i32, i32, i32) {
    %c0_i32 = arith.constant 0 : i32
    %c0_i32_0 = arith.constant 0 : i32
    %c0_i32_1 = arith.constant 0 : i32
    return %arg0, %c0_i32, %c0_i32_0 : i32, i32, i32
  }
}

</mosaic_0001>

<bundles_post_ra>
// kernel: tpu_custom_call.1
= control target key start
LH: loop header
LB: loop body
LE: loop exit
PB: predicated region body
PF: predicated region fallthrough
CT: control target
= control target key end

     0   :  { %s2052_s0 = inlined_call_operand.hbm [shape: bf16[8,16,16], index: 0, kind: input, shape index: {}]   ;;  %s2053_s1 = inlined_call_operand.hbm [shape: f32[8,16,16], index: 1, kind: input, shape index: {}]   ;;  %s2054_s2 = inlined_call_operand.hbm [shape: f32[2,8,128], index: 2, kind: output, shape index: {0}]   ;;  %s2055_s3 = inlined_call_operand.hbm [shape: f32[2,8,128], index: 3, kind: output, shape index: {1}]  }
   0x1   :  { %2056 = sst [smem:[#allocation15_spill]] %s2052_s0 }
   0x2   :  { %9 = vsyncpa [#allocation4], 0 }
   0x3   :  { %11 = vsyncpa [#allocation4 + $0x1], 0 }
   0x4   :  { %12 = vsyncpa [#allocation7], 0 }
   0x5   :  { %14 = vsyncpa [#allocation7 + $0x1], 0 }
   0x6   :  { %15 = vsyncpa [#allocation5], 0 }
   0x7   :  { %17 = vsyncpa [#allocation5 + $0x1], 0 }
   0x8   :  { %18 = vsyncpa [#allocation10], 0 }
   0x9   :  { %20 = vsyncpa [#allocation10 + $0x1], 0  ;;  %s1542_s12 = smov 0   ;;  %s1544_s13 = smov 0  }
   0xa   :  { %s1546_s14 = smov 0   ;;  %s1548_s15 = smov 0  }
   0xb LB: > { %s1563_s16 = sadd.s32 4294967295, %s1510_s15   ;;  %s1109_s17 = sadd.s32 4294967294, %s1510_s15   ;;  %s1510_s15 = sphi %s1548_s15, %s2068_s15   ;;  %s1506_s14 = sphi %s1546_s14, %s2067_s14   ;;  %s1502_s13 = sphi %s1544_s13, %s2066_s13   ;;  %s1498_s12 = sphi %s1542_s12, %s2065_s12  }
   0xc   : > { %s1567_s18 = sadd.s32 1, %s1510_s15   ;;  %s33_s19 = sadd.s32 1, %s1506_s14 }
   0xd   : > { %s30_s20 = ssub.s32 %s1510_s15, %s1567_s18  ;;  %p40_p0 = scmp.ne.s32.totalorder %s1506_s14, %s1502_s13 }
   0xe   : > { %p31_p1 = scmp.eq.s32.totalorder %s30_s20, 0  ;;  %p41_p2 = scmp.eq.s32.totalorder %s1510_s15, 0 }
   0xf   : > { %p46_p3 = scmp.ne.s32.totalorder %s1502_s13, %s1498_s12  ;;  %p47_p4 = scmp.eq.s32.totalorder %s1563_s16, 0 }
  0x10   : > { %s1579_s21 = scalar_select %p31_p1, %s1506_s14, %s33_s19  }
  0x11   : > { %p1581_p5 = por %p41_p2, %p40_p0  ;;  %p1585_p6 = por %p47_p4, %p46_p3 }
  0x12   : > { %p96_p7 = scmp.eq.s32.totalorder %s1563_s16, 1  ;;  %p102_p8 = scmp.eq.s32.totalorder %s1109_s17, 1 }
  0x13   : > { %p1268_p10 = scmp.lt.s32.totalorder %s1510_s15, 2  ;;  %s1601_s26 = sand.u32 1, %s1506_s14  }
  0x14   : > { %p1592_p11 = por %p96_p7, %p40_p0  ;;  %p1596_p12 = por %p102_p8, %p46_p3 }
  0x15   : > { %s1140_s27 = sshll.u32 %s1510_s15, 5  ;;  %s1112_s28 = sshll.u32 %s1601_s26, 5 }
  0x16   : > { %s2061_s0 = sld [smem:[#allocation15_spill]]  ;;  %s152_s6 = scalar_lea.vmem [#allocation3], %s1112_s28 }
  0x17   : > { %s161_s7 = sshll.u32 %s152_s6, 4  ;;  %p1610_p13 = pnand %p1268_p10, %p1581_p5  ;;  %s162_s7 = int_to_ptr.vmem [resolvable:$true] %s161_s7 }
  0x18   : > { %p1120_p0 = scmp.ge.s32.totalorder %s1510_s15, 1  ;;  %p192_p1 = scmp.lt.s32.totalorder %s1510_s15, 3 }
  0x19   : > { %s149_s9 = scalar_lea.sflag [#allocation4], %s1601_s26  ;;  %p1352_p3 = pneg %p1610_p13 }
  0x1c   : > { %s158_s4 = scalar_lea.hbm %s2061_s0, %s1140_s27  ;;  %s1355_s20 = scalar_lea.hbm %s2061_s0, 64 }
  0x1d   : > { %s159_s5 = sshll.u32 %s158_s4, 4  ;;  %s160_s5 = int_to_ptr.hbm [resolvable:$true] %s159_s5 }
  0x1e   : > { %s1348_s10 = sshra.s32 %s160_s5, 4  ;;  %s1349_s10 = int_to_ptr.hbm [resolvable:$true] %s1348_s10 }
  0x1f   : > { %s1350_s11 = scalar_lea.hbm %s1349_s10, 32  ;;  %p1356_p5 = scmp.lt.s32.totalorder %s1349_s10, %s2061_s0 }
  0x20   : > { %p1351_p2 = scmp.ne.s32.totalorder %s1349_s10, %s1350_s11  ;;  %p1357_p8 = scmp.lt.s32.totalorder %s1355_s20, %s1350_s11 }
  0x22   : > { %p1353_p4 = pnand %p1352_p3, %p1351_p2  ;;  %p1358_p10 = por %p1357_p8, %p1356_p5 }
  0x24   : > { %p1354_p7 = pneg %p1353_p4 }
  0x26   : > { %p1359_p9 = pnand %p1358_p10, %p1354_p7 }
  0x28   : > { %1362 = shalt.err (!%p1359_p9)
}
  0x29   : > { %s1512_s28 = smov 64   ;;  %s1513_s29 = smov 4  }
  0x2a   : > { %1257 = dma.hbm_to_vmem [thread:$0]  (!%p1610_p13), %s160_s5, 512, %s162_s7, %s149_s9, %s1512_s28, %s1512_s28, %s1513_s29  }
  0x2b   : > { %p1634_p2 = pnand %p1120_p0, %p192_p1  ;;  %s1116_s4 = sshll.u32 %s1601_s26, 6 }
  0x2c   : > { %s1142_s6 = sshll.u32 %s1510_s15, 6  ;;  %s175_s20 = scalar_lea.vmem [#allocation6], %s1116_s4 }
  0x2d   : > { %s181_s17 = scalar_lea.hbm %s2053_s1, %s1142_s6  ;;  %s184_s22 = sshll.u32 %s175_s20, 4  ;;  %s185_s22 = int_to_ptr.vmem [resolvable:$true] %s184_s22 }
  0x2e   : > { %s182_s19 = sshll.u32 %s181_s17, 4  ;;  %s172_s27 = scalar_lea.sflag [#allocation7], %s1601_s26  ;;  %s183_s19 = int_to_ptr.hbm [resolvable:$true] %s182_s19 }
  0x2f   : > { %s1378_s0 = sshra.s32 %s183_s19, 4  ;;  %s1385_s28 = scalar_lea.hbm %s2053_s1, 128  ;;  %s1379_s0 = int_to_ptr.hbm [resolvable:$true] %s1378_s0 }
  0x30   : > { %s1380_s5 = scalar_lea.hbm %s1379_s0, 64  ;;  %p1386_p4 = scmp.lt.s32.totalorder %s1379_s0, %s2053_s1 }
  0x31   : > { %p1381_p9 = scmp.ne.s32.totalorder %s1379_s0, %s1380_s5  ;;  %p1387_p7 = scmp.lt.s32.totalorder %s1385_s28, %s1380_s5 }
  0x33   : > { %p1383_p0 = pnand %p1381_p9, %p1352_p3  ;;  %p1388_p5 = por %p1387_p7, %p1386_p4 }
  0x35   : > { %p1384_p1 = pneg %p1383_p0 }
  0x37   : > { %p1389_p8 = pnand %p1388_p5, %p1384_p1 }
  0x39   : > { %1392 = shalt.err (!%p1389_p8)
}
  0x3a   : > { %s1514_s26 = smov 128   ;;  %s1515_s4 = smov 8  }
  0x3b   : > { %1260 = dma.hbm_to_vmem [thread:$0]  (!%p1610_p13), %s183_s19, 1024, %s185_s22, %s172_s27, %s1514_s26, %s1514_s26, %s1515_s4  }
  0x3c   : > { %196 = sbr.rel (%p1634_p2) target bundleno = 895 (0x37f), region = 28  ;;  %s1658_s10 = sand.u32 (!%p1634_p2), 1, %s1502_s13  }
  0x3d   : > { %s1121_s11 = sshll.u32 (!%p1634_p2), %s1658_s10, 5  ;;  %s199_s0 = scalar_lea.sflag (!%p1634_p2), [#allocation4], %s1658_s10 }
  0x3e   : > { %s202_s17 = scalar_lea.vmem (!%p1634_p2), [#allocation3], %s1121_s11 }
  0x41   : > { %1481 = dma.done.wait (%p1585_p6), %s199_s0, 512  }
  0x42   : > { %1483 = vsyncadd (%p1585_p6), %s199_s0, 4294966784  ;;  %s1122_s8 = sshll.u32 %s1658_s10, 6  ;;  %s209_s30 = scalar_lea.sflag [#allocation7], %s1658_s10 }
  0x43   : > { %s1668_s19 = scalar_lea.vmem [#allocation6], %s1122_s8 }
  0x44   : > { %1485 = dma.done.wait (%p1585_p6), %s209_s30, 1024  }
  0x45   : > { %1487 = vsyncadd (%p1585_p6), %s209_s30, 4294966272  ;;  %vm272_vm0 = vcmask 211968   ;;  %v1516_v0 = vmov 0.0   ;;  %v1160_v1 = vld [vmem:[%s202_s17 + $0x10] sm:$0xff]   ;;  %v1144_v2 = vld [vmem:[%s202_s17] sm:$0xff]   ;;  %s1517_s23 = smov 5  }
  0x46   : > { %282 = vst.msk [vmem:[#allocation2 + $0x40] sm:$0xff] %vm272_vm0, %v1516_v0  ;;  %v1688_v3 = vunpack.c.l.bf16 %v1160_v1  ;;  %v1690_v4 = vunpack.c.h.bf16 %v1160_v1  ;;  %v1692_v5 = vunpack.c.l.bf16 %v1144_v2  ;;  %v1694_v6 = vunpack.c.h.bf16 %v1144_v2  ;;  %v1161_v7 = vld [vmem:[%s202_s17 + $0x18] sm:$0xff]   ;;  %v1159_v8 = vld [vmem:[%s202_s17 + $0x8] sm:$0xff]   ;;  %s1518_s20 = smov 127   ;;  %s1519_s22 = smov 126  }
  0x47   : > { %283 = vst.msk [vmem:[#allocation2 + $0x48] sm:$0xff] %vm272_vm0, %v1516_v0  ;;  %v1708_v11 = vunpack.c.l.bf16 %v1161_v7  ;;  %v1710_v12 = vunpack.c.h.bf16 %v1161_v7  ;;  %v1712_v13 = vunpack.c.l.bf16 %v1159_v8  ;;  %v1714_v14 = vunpack.c.h.bf16 %v1159_v8  ;;  %s1520_s27 = smov 124   ;;  %s1521_s5 = smov 125  }
  0x48   : > { %284 = vst.msk [vmem:[#allocation2 + $0x50] sm:$0xff] %vm272_vm0, %v1516_v0  ;;  %v1322_v9 = vpack.i.bf16 %v1690_v4, %v1688_v3  ;;  %v1312_v10 = vpack.i.bf16 %v1694_v6, %v1692_v5  ;;  %vm276_vm1 = vcmask 205824   ;;  %vm322_vm2 = vcmask 171048   ;;  %s1123_s7 = sshll.u32 %s1658_s10, 3  ;;  %s1135_s9 = sshll.u32 %s1563_s16, 3 }
  0x49   : > { %273 = vst.msk [vmem:[#allocation2] sm:$0xff] %vm272_vm0, %v1516_v0  ;;  %v1327_v15 = vpack.i.bf16 %v1710_v12, %v1708_v11  ;;  %v1317_v16 = vpack.i.bf16 %v1714_v14, %v1712_v13  ;;  %vm363_vm3 = vcmask 1046528   ;;  %vm440_vm4 = vcmask 1045504   ;;  %s964_s6 = scalar_lea.hbm %s2054_s2, %s1135_s9  ;;  %s245_s26 = scalar_lea.vmem [#allocation9], %s1123_s7 }
  0x4a   : > { %274 = vst.msk [vmem:[#allocation2 + $0x8] sm:$0xff] %vm272_vm0, %v1516_v0  ;;  %1323 = vrot.lane.b32.xlu1 %v1322_v9, %s1517_s23  ;;  %1313 = vrot.lane.b32.xlu0 %v1312_v10, %s1517_s23  ;;  %vm505_vm5 = vcmask 1043456   ;;  %vm562_vm6 = vcmask 1044480   ;;  %vm1202_vm7 = vcmp.lt.s32.totalorder %v1692_v5, 0  ;;  %vm1207_vm8 = vcmp.lt.s32.totalorder %v1694_v6, 0  ;;  %s980_s4 = sshll.u32 %s245_s26, 4  ;;  %s978_s17 = scalar_lea.hbm %s2055_s3, %s1135_s9  ;;  %s2005_s4 = int_to_ptr.vmem [resolvable:$true] %s980_s4 }
  0x4b   : > { %275 = vst.msk [vmem:[#allocation2 + $0x10] sm:$0xff] %vm272_vm0, %v1516_v0  ;;  %vm1222_vm10 = vcmp.lt.s32.totalorder %v1688_v3, 0  ;;  %vm1212_vm11 = vcmp.lt.s32.totalorder %v1712_v13, 0  ;;  %vm879_vm14 = vcmask 130048   ;;  %s238_s8 = scalar_lea.vmem [#allocation8], %s1123_s7  ;;  %s1428_s28 = scalar_lea.hbm %s2054_s2, 16 }
  0x4c   : > { %278 = vst.msk [vmem:[#allocation2 + $0x20] sm:$0xff] %vm272_vm0, %v1516_v0  ;;  %s966_s30 = sshll.u32 %s238_s8, 4  ;;  %s967_s30 = int_to_ptr.vmem [resolvable:$true] %s966_s30 }
  0x4d   : > { %279 = vst.msk [vmem:[#allocation2 + $0x28] sm:$0xff] %vm272_vm0, %v1516_v0 }
  0x4e   : > { %280 = vst.msk [vmem:[#allocation2 + $0x30] sm:$0xff] %vm272_vm0, %v1516_v0 }
  0x4f   : > { %286 = vst.msk [vmem:[#allocation2 + $0x60] sm:$0xff] %vm272_vm0, %v1516_v0 }
  0x50   : > { %287 = vst.msk [vmem:[#allocation2 + $0x68] sm:$0xff] %vm272_vm0, %v1516_v0 }
  0x51   : > { %288 = vst.msk [vmem:[#allocation2 + $0x70] sm:$0xff] %vm272_vm0, %v1516_v0  ;;  %vm1217_vm0 = vcmp.lt.s32.totalorder %v1714_v14, 0 }
  0x52   : > { %1328 = vrot.lane.b32.xlu1 %v1327_v15, %s1517_s23  ;;  %1318 = vrot.lane.b32.xlu0 %v1317_v16, %s1517_s23  ;;  %277 = vst.msk [vmem:[#allocation2 + $0x18] sm:$0x3] %vm276_vm1, %v1516_v0  ;;  %s982_s23 = sshll.u32 %s978_s17, 4  ;;  %s2007_s23 = int_to_ptr.hbm [resolvable:$true] %s982_s23 }
  0x53   : > { %281 = vst.msk [vmem:[#allocation2 + $0x38] sm:$0x3] %vm276_vm1, %v1516_v0 }
  0x54   : > { %285 = vst.msk [vmem:[#allocation2 + $0x58] sm:$0x3] %vm276_vm1, %v1516_v0 }
  0x55   : > { %289 = vst.msk [vmem:[#allocation2 + $0x78] sm:$0x3] %vm276_vm1, %v1516_v0  ;;  %vm1237_vm1 = vcmp.lt.s32.totalorder %v1710_v12, 0 }
  0x59   : > { %v334_v22 = vld [vmem:[#allocation2 + $0x18] sm:$0x3] }
  0x5a   : > { %v369_v25 = vrot.slane %v334_v22, 1  ;;  %v1729_v26 = vld [vmem:[#allocation2 + $0x38] sm:$0x3] }
  0x5b   : > { %v342_v24 = vld [vmem:[#allocation2 + $0x58] sm:$0x3]  ;;  %v376_v32 = vrot.slane %v1729_v26, 1 }
  0x5c   : > { %v1731_v27 = vld [vmem:[#allocation2 + $0x78] sm:$0x3]  ;;  %v383_v28 = vrot.slane %v342_v24, 1  ;;  %v411_v31 = vmax.f32 %v334_v22, %v369_v25 }
  0x5d   : > { %v390_v33 = vrot.slane %v1731_v27, 1  ;;  %v1741_v45 = vmax.f32 %v1729_v26, %v376_v32 }
  0x5e   : > { %v419_v37 = vmax.f32 %v342_v24, %v383_v28  ;;  %v446_v44 = vrot.slane %v411_v31, 2 }
  0x5f   : > { %v1747_v51 = vmax.f32 %v1731_v27, %v390_v33  ;;  %v453_v8 = vrot.slane %v1741_v45, 2 }
  0x60   : > { %v460_v53 = vrot.slane %v419_v37, 2 }
  0x61   : > { %v467_v16 = vrot.slane %v1747_v51, 2 }
  0xbc   : > { %v1324_v17 = vpop.permute.xlu1 %1323  ;;  %v1314_v18 = vpop.permute.xlu0 %1313 }
  0xbd   : > { %v1326_v19 = vunpack.i.h.bf16 %v1324_v17  ;;  %v1325_v20 = vunpack.i.l.bf16 %v1324_v17  ;;  %v1316_v21 = vunpack.i.h.bf16 %v1314_v18  ;;  %v1315_v23 = vunpack.i.l.bf16 %v1314_v18 }
  0xbf   : > { %328 = vst.msk [vmem:[#allocation2 + $0x4d] sm:$0xff] %vm322_vm2, %v1326_v19 }
  0xc0   : > { %327 = vst.msk [vmem:[#allocation2 + $0x45] sm:$0xff] %vm322_vm2, %v1325_v20 }
  0xc1   : > { %324 = vst.msk [vmem:[#allocation2 + $0xd] sm:$0xff] %vm322_vm2, %v1316_v21 }
  0xc2   : > { %323 = vst.msk [vmem:[#allocation2 + $0x5] sm:$0xff] %vm322_vm2, %v1315_v23 }
  0xc4   : > { %v1329_v29 = vpop.permute.xlu1 %1328  ;;  %v1319_v30 = vpop.permute.xlu0 %1318 }
  0xc5   : > { %v1331_v34 = vunpack.i.h.bf16 %v1329_v29  ;;  %v1330_v35 = vunpack.i.l.bf16 %v1329_v29  ;;  %v1321_v36 = vunpack.i.h.bf16 %v1319_v30  ;;  %v1320_v38 = vunpack.i.l.bf16 %v1319_v30 }
  0xc6   : > { %v341_v39 = vld [vmem:[#allocation2 + $0x50] sm:$0xff] }
  0xc7   : > { %330 = vst.msk [vmem:[#allocation2 + $0x6d] sm:$0xff] %vm322_vm2, %v1331_v34  ;;  %v340_v40 = vld [vmem:[#allocation2 + $0x48] sm:$0xff]  ;;  %v381_v41 = vrot.slane %v341_v39, 1  ;;  %v339_v42 = vld [vmem:[#allocation2 + $0x40] sm:$0xff] }
  0xc8   : > { %329 = vst.msk [vmem:[#allocation2 + $0x65] sm:$0xff] %vm322_vm2, %v1330_v35  ;;  %v333_v43 = vld [vmem:[#allocation2 + $0x10] sm:$0xff]  ;;  %v379_v46 = vrot.slane %v340_v40, 1  ;;  %v378_v47 = vrot.slane %v339_v42, 1 }
  0xc9   : > { %326 = vst.msk [vmem:[#allocation2 + $0x2d] sm:$0xff] %vm322_vm2, %v1321_v36  ;;  %v331_v48 = vld [vmem:[#allocation2] sm:$0xff]  ;;  %v332_v49 = vld [vmem:[#allocation2 + $0x8] sm:$0xff]  ;;  %v367_v50 = vrot.slane %v333_v43, 1  ;;  %v384_v52 = vsel %vm363_vm3, %v381_v41, %v383_v28 }
  0xca   : > { %325 = vst.msk [vmem:[#allocation2 + $0x25] sm:$0xff] %vm322_vm2, %v1320_v38  ;;  %v364_v54 = vrot.slane %v331_v48, 1  ;;  %v365_v55 = vrot.slane %v332_v49, 1  ;;  %v382_v56 = vsel %vm363_vm3, %v379_v46, %v381_v41  ;;  %v1752_v57 = vmax.f32 %v341_v39, %v384_v52 }
  0xcb   : > { %v370_v58 = vsel %vm363_vm3, %v367_v50, %v369_v25  ;;  %v1755_v59 = vmax.f32 %v340_v40, %v382_v56  ;;  %v380_v60 = vsel %vm363_vm3, %v378_v47, %v379_v46  ;;  %vm1227_vm2 = vcmp.lt.s32.totalorder %v1690_v4, 0 }
  0xcc   : > { %v366_v61 = vsel %vm363_vm3, %v364_v54, %v365_v55  ;;  %v368_v62 = vsel %vm363_vm3, %v365_v55, %v367_v50  ;;  %v410_v63 = vmax.f32 %v333_v43, %v370_v58  ;;  %v458_v1 = vrot.slane %v1752_v57, 2 }
  0xcd   : > { %v408_v2 = vmax.f32 %v331_v48, %v366_v61  ;;  %v409_v7 = vmax.f32 %v332_v49, %v368_v62  ;;  %v456_v9 = vrot.slane %v1755_v59, 2  ;;  %v1767_v18 = vmax.f32 %v339_v42, %v380_v60 }
  0xce   : > { %v444_v10 = vrot.slane %v410_v63, 2  ;;  %v345_v15 = vld [vmem:[#allocation2 + $0x70] sm:$0xff]  ;;  %v1765_v17 = vsel %vm440_vm4, %v458_v1, %v460_v53 }
  0xcf   : > { %v441_v19 = vrot.slane %v408_v2, 2  ;;  %v442_v20 = vrot.slane %v409_v7, 2  ;;  %v343_v21 = vld [vmem:[#allocation2 + $0x60] sm:$0xff]  ;;  %v344_v22 = vld [vmem:[#allocation2 + $0x68] sm:$0xff]  ;;  %v388_v23 = vrot.slane %v345_v15, 1  ;;  %v459_v24 = vsel %vm440_vm4, %v456_v9, %v458_v1 }
  0xd0   : > { %v447_v25 = vsel %vm440_vm4, %v444_v10, %v446_v44  ;;  %v337_v28 = vld [vmem:[#allocation2 + $0x30] sm:$0xff]  ;;  %v385_v29 = vrot.slane %v343_v21, 1  ;;  %v386_v30 = vrot.slane %v344_v22, 1  ;;  %v1774_v31 = vmax.f32 %v1755_v59, %v459_v24 }
  0xd1   : > { %v443_v34 = vsel %vm440_vm4, %v441_v19, %v442_v20  ;;  %v445_v35 = vsel %vm440_vm4, %v442_v20, %v444_v10  ;;  %v483_v36 = vmax.f32 %v410_v63, %v447_v25  ;;  %v336_v37 = vld [vmem:[#allocation2 + $0x28] sm:$0xff]  ;;  %v374_v38 = vrot.slane %v337_v28, 1  ;;  %v335_v39 = vld [vmem:[#allocation2 + $0x20] sm:$0xff] }
  0xd2   : > { %v481_v40 = vmax.f32 %v408_v2, %v443_v34  ;;  %v482_v41 = vmax.f32 %v409_v7, %v445_v35  ;;  %v372_v42 = vrot.slane %v336_v37, 1  ;;  %v371_v43 = vrot.slane %v335_v39, 1 }
  0xd3   : > { %v509_v44 = vrot.slane %v483_v36, 4  ;;  %v377_v45 = vsel %vm363_vm3, %v374_v38, %v376_v32  ;;  %v387_v46 = vsel %vm363_vm3, %v385_v29, %v386_v30  ;;  %v389_v47 = vsel %vm363_vm3, %v386_v30, %v388_v23 }
  0xd4   : > { %v506_v48 = vrot.slane %v481_v40, 4  ;;  %v507_v49 = vrot.slane %v482_v41, 4  ;;  %v375_v50 = vsel %vm363_vm3, %v372_v42, %v374_v38  ;;  %v414_v52 = vmax.f32 %v337_v28, %v377_v45 }
  0xd5   : > { %v413_v53 = vmax.f32 %v336_v37, %v375_v50  ;;  %v373_v54 = vsel %vm363_vm3, %v371_v43, %v372_v42  ;;  %v540_v55 = vmax.f32 %v483_v36, %v509_v44  ;;  %v391_v56 = vsel %vm363_vm3, %v388_v23, %v390_v33 }
  0xd6   : > { %v508_v26 = vsel %vm505_vm5, %v506_v48, %v507_v49  ;;  %v510_v32 = vsel %vm505_vm5, %v507_v49, %v509_v44  ;;  %v451_v58 = vrot.slane %v414_v52, 2  ;;  %v412_v60 = vmax.f32 %v335_v39, %v373_v54 }
  0xd7   : > { %v538_v61 = vmax.f32 %v481_v40, %v508_v26  ;;  %v539_v62 = vmax.f32 %v482_v41, %v510_v32  ;;  %v449_v63 = vrot.slane %v413_v53, 2  ;;  %v566_v1 = vrot.slane %v540_v55, 3 }
  0xd8   : > { %v454_v2 = vsel %vm440_vm4, %v451_v58, %v453_v8  ;;  %v448_v7 = vrot.slane %v412_v60, 2  ;;  %v420_v10 = vmax.f32 %v343_v21, %v387_v46  ;;  %v421_v19 = vmax.f32 %v344_v22, %v389_v47 }
  0xd9   : > { %v563_v20 = vrot.slane %v538_v61, 3  ;;  %v564_v24 = vrot.slane %v539_v62, 3  ;;  %v452_v27 = vsel %vm440_vm4, %v449_v63, %v451_v58  ;;  %v486_v33 = vmax.f32 %v414_v52, %v454_v2 }
  0xda   : > { %v485_v23 = vmax.f32 %v413_v53, %v452_v27  ;;  %v450_v25 = vsel %vm440_vm4, %v448_v7, %v449_v63  ;;  %v422_v28 = vmax.f32 %v345_v15, %v391_v56  ;;  %v462_v29 = vrot.slane %v420_v10, 2 }
  0xdb   : > { %v565_v30 = vsel %vm562_vm6, %v563_v20, %v564_v24  ;;  %v514_v34 = vrot.slane %v486_v33, 4  ;;  %v484_v35 = vmax.f32 %v412_v60, %v450_v25  ;;  %v567_v36 = vsel %vm562_vm6, %v564_v24, %v566_v1 }
  0xdc   : > { %v1795_v8 = vmax.f32 %v538_v61, %v565_v30  ;;  %v512_v21 = vrot.slane %v485_v23, 4  ;;  %v1797_v22 = vmax.f32 %v539_v62, %v567_v36  ;;  %v463_v37 = vrot.slane %v421_v19, 2 }
  0xdd   : > { %v543_v38 = vmax.f32 %v486_v33, %v514_v34  ;;  %v511_v39 = vrot.slane %v484_v35, 4  ;;  %v465_v40 = vrot.slane %v422_v28, 2  ;;  %v489_v41 = vmax.f32 %v1752_v57, %v1765_v17 }
  0xde   : > { %607 = vrot.lane.b32.xlu2 %v1795_v8, %s1518_s20  ;;  %v515_v15 = vsel %vm505_vm5, %v512_v21, %v514_v34  ;;  %v464_v42 = vsel %vm440_vm4, %v462_v29, %v463_v37  ;;  %v517_v43 = vrot.slane %v1774_v31, 4  ;;  %v455_v44 = vrot.slane %v1767_v18, 2 }
  0xdf   : > { %v542_v45 = vmax.f32 %v485_v23, %v515_v15  ;;  %v571_v46 = vrot.slane %v543_v38, 3  ;;  %v513_v47 = vsel %vm505_vm5, %v511_v39, %v512_v21  ;;  %v466_v48 = vsel %vm440_vm4, %v463_v37, %v465_v40 }
  0xe0   : > { %v541_v49 = vmax.f32 %v484_v35, %v513_v47  ;;  %v468_v57 = vsel %vm440_vm4, %v465_v40, %v467_v16  ;;  %v490_v17 = vmax.f32 %v420_v10, %v464_v42  ;;  %v491_v50 = vmax.f32 %v421_v19, %v466_v48 }
  0xe1   : > { %v569_v52 = vrot.slane %v542_v45, 3  ;;  %v492_v53 = vmax.f32 %v422_v28, %v468_v57  ;;  %v519_v54 = vrot.slane %v489_v41, 4  ;;  %v457_v55 = vsel %vm440_vm4, %v455_v44, %v456_v9 }
  0xe2   : > { %v568_v56 = vrot.slane %v541_v49, 3  ;;  %v521_v26 = vrot.slane %v490_v17, 4  ;;  %v522_v32 = vrot.slane %v491_v50, 4  ;;  %v487_v58 = vmax.f32 %v1767_v18, %v457_v55 }
  0xe3   : > { %v572_v60 = vsel %vm562_vm6, %v569_v52, %v571_v46  ;;  %v524_v61 = vrot.slane %v492_v53, 4  ;;  %v520_v51 = vsel %vm505_vm5, %v517_v43, %v519_v54  ;;  %v546_v16 = vmax.f32 %v489_v41, %v519_v54 }
  0xe4   : > { %v594_v62 = vmax.f32 %v542_v45, %v572_v60  ;;  %v570_v63 = vsel %vm562_vm6, %v568_v56, %v569_v52  ;;  %v523_v1 = vsel %vm505_vm5, %v521_v26, %v522_v32  ;;  %v545_v59 = vmax.f32 %v1774_v31, %v520_v51 }
  0xe5   : > { %v593_v2 = vmax.f32 %v541_v49, %v570_v63  ;;  %v525_v9 = vsel %vm505_vm5, %v522_v32, %v524_v61  ;;  %v547_v7 = vmax.f32 %v490_v17, %v523_v1  ;;  %v576_v19 = vrot.slane %v546_v16, 3 }
  0xe6   : > { %613 = vrot.lane.b32.xlu1 %v594_v62, %s1518_s20  ;;  %609 = vrot.lane.b32.xlu2 %v1797_v22, %s1518_s20  ;;  %v548_v18 = vmax.f32 %v491_v50, %v525_v9  ;;  %v574_v10 = vrot.slane %v545_v59, 3  ;;  %v516_v20 = vrot.slane %v487_v58, 4  ;;  %v549_v29 = vmax.f32 %v492_v53, %v524_v61 }
  0xe7   : > { %611 = vrot.lane.b32.xlu0 %v593_v2, %s1518_s20  ;;  %v578_v24 = vrot.slane %v547_v7, 3  ;;  %vm1232_vm4 = vcmp.lt.s32.totalorder %v1708_v11, 0 }
  0xe8   : > { %v579_v27 = vrot.slane %v548_v18, 3  ;;  %v518_v33 = vsel %vm505_vm5, %v516_v20, %v517_v43  ;;  %v577_v25 = vsel %vm562_vm6, %v574_v10, %v576_v19  ;;  %v581_v21 = vrot.slane %v549_v29, 3 }
  0xe9   : > { %v544_v31 = vmax.f32 %v487_v58, %v518_v33  ;;  %v596_v34 = vmax.f32 %v545_v59, %v577_v25 }
  0xea   : > { %v580_v23 = vsel %vm562_vm6, %v578_v24, %v579_v27  ;;  %v582_v37 = vsel %vm562_vm6, %v579_v27, %v581_v21  ;;  %v791_v21 = vsub.f32 1.0, %v1692_v5 }
  0xeb   : > { %v573_v28 = vrot.slane %v544_v31, 3  ;;  %v597_v30 = vmax.f32 %v547_v7, %v580_v23  ;;  %v598_v38 = vmax.f32 %v548_v18, %v582_v37 }
  0xed   : > { %v575_v35 = vsel %vm562_vm6, %v573_v28, %v574_v10 }
  0xee   : > { %619 = vrot.lane.b32.xlu1 %v597_v30, %s1518_s20  ;;  %v595_v36 = vmax.f32 %v544_v31, %v575_v35  ;;  %v265_v35 = vld [vmem:[%s1668_s19 + $0x8] sm:$0xff] }
  0xef   : > { %617 = vrot.lane.b32.xlu0 %v596_v34, %s1518_s20  ;;  %v832_v37 = vsub.f32 1.0, %v265_v35 }
  0xf0   : > { %615 = vrot.lane.b32.xlu2 %v595_v36, %s1518_s20 }
  0xf8   : > { %621 = vrot.lane.b32.xlu2 %v598_v38, %s1518_s20 }
 0x138   : > { %v608_v39 = vpop.permute.xlu2 %607 }
 0x139   : > { %v631_v40 = vmax.f32 %v1795_v8, %v608_v39  ;;  %v1204_v39 = vfloor.f32 %v1692_v5 }
 0x13b   : > { %647 = vrot.lane.b32.xlu0 %v631_v40, %s1519_s22 }
 0x140   : > { %v610_v41 = vpop.permute.xlu2 %609 }
 0x141   : > { %v632_v15 = vmax.f32 %v1797_v22, %v610_v41  ;;  %v266_v41 = vld [vmem:[%s1668_s19 + $0x10] sm:$0xff] }
 0x143   : > { %649 = vrot.lane.b32.xlu1 %v632_v15, %s1519_s22 }
 0x14a   : > { %v616_v42 = vpop.permute.xlu2 %615 }
 0x14b   : > { %v635_v43 = vmax.f32 %v595_v36, %v616_v42 }
 0x14d   : > { %655 = vrot.lane.b32.xlu1 %v635_v43, %s1519_s22 }
 0x152   : > { %v622_v44 = vpop.permute.xlu2 %621 }
 0x153   : > { %v638_v45 = vmax.f32 %v598_v38, %v622_v44  ;;  %v1203_v38 = vceil.f32 %v1692_v5  ;;  %v1209_v44 = vfloor.f32 %v1694_v6 }
 0x155   : > { %661 = vrot.lane.b32.xlu1 %v638_v45, %s1519_s22 }
 0x158   : > { %v614_v46 = vpop.permute.xlu1 %613 }
 0x159   : > { %v634_v47 = vmax.f32 %v594_v62, %v614_v46  ;;  %v612_v48 = vpop.permute.xlu0 %611 }
 0x15a   : > { %v633_v49 = vmax.f32 %v593_v2, %v612_v48 }
 0x15b   : > { %653 = vrot.lane.b32.xlu0 %v634_v47, %s1519_s22 }
 0x15c   : > { %651 = vrot.lane.b32.xlu2 %v633_v49, %s1519_s22 }
 0x160   : > { %v620_v57 = vpop.permute.xlu1 %619 }
 0x161   : > { %v637_v8 = vmax.f32 %v597_v30, %v620_v57  ;;  %v618_v17 = vpop.permute.xlu0 %617  ;;  %v264_v30 = vld [vmem:[%s1668_s19] sm:$0xff] }
 0x162   : > { %v636_v50 = vmax.f32 %v596_v34, %v618_v17  ;;  %v831_v34 = vsub.f32 1.0, %v264_v30  ;;  %v815_v48 = vmul.f32 %v264_v30, %v264_v30 }
 0x163   : > { %659 = vrot.lane.b32.xlu0 %v637_v8, %s1519_s22 }
 0x164   : > { %657 = vrot.lane.b32.xlu2 %v636_v50, %s1519_s22  ;;  %v839_v36 = vadd.f32 1e-05, %v831_v34  ;;  %s949_s22 = scalar_lea.sflag [#allocation5], %s1658_s10 }
 0x166   : > { %1332 = vlog2.f32 %v839_v36 }
 0x1ad   : > { %v648_v22 = vpop.permute.xlu0 %647 }
 0x1ae   : > { %v671_v52 = vmax.f32 %v631_v40, %v648_v22  ;;  %v799_v40 = vmul.f32 %v791_v21, %v791_v21 }
 0x1b0   : > { %687 = vrot.lane.b32.xlu2 %v671_v52, %s1520_s27  ;;  %v807_v57 = vmul.f32 %v799_v40, %v799_v40 }
 0x1b5   : > { %v650_v53 = vpop.permute.xlu1 %649 }
 0x1b6   : > { %v672_v54 = vmax.f32 %v632_v15, %v650_v53  ;;  %v652_v55 = vpop.permute.xlu2 %651  ;;  %v840_v15 = vadd.f32 1e-05, %v832_v37 }
 0x1b7   : > { %v673_v56 = vmax.f32 %v633_v49, %v652_v55  ;;  %v1205_v49 = vsel %vm1202_vm7, %v1203_v38, %v1204_v39  ;;  %v267_v38 = vld [vmem:[%s1668_s19 + $0x18] sm:$0xff] }
 0x1b8   : > { %689 = vrot.lane.b32.xlu0 %v672_v54, %s1520_s27  ;;  %1334 = vlog2.f32 %v840_v15  ;;  %v1206_v53 = vcvt.f32.s32 %v1205_v49 }
 0x1b9   : > { %691 = vrot.lane.b32.xlu1 %v673_v56, %s1520_s27 }
 0x1be   : > { %v658_v26 = vpop.permute.xlu2 %657 }
 0x1bf   : > { %v656_v32 = vpop.permute.xlu1 %655  ;;  %v676_v58 = vmax.f32 %v636_v50, %v658_v26  ;;  %v823_v26 = vmul.f32 %v815_v48, %v807_v57 }
 0x1c0   : > { %v675_v60 = vmax.f32 %v635_v43, %v656_v32  ;;  %v1208_v43 = vceil.f32 %v1694_v6 }
 0x1c1   : > { %697 = vrot.lane.b32.xlu1 %v676_v58, %s1520_s27 }
 0x1c2   : > { %695 = vrot.lane.b32.xlu0 %v675_v60, %s1520_s27  ;;  %v1210_v50 = vsel %vm1207_vm8, %v1208_v43, %v1209_v44  ;;  %v834_v44 = vsub.f32 1.0, %v267_v38 }
 0x1c3   : > { %v1211_v32 = vcvt.f32.s32 %v1210_v50 }
 0x1c7   : > { %v662_v61 = vpop.permute.xlu1 %661 }
 0x1c8   : > { %v678_v51 = vmax.f32 %v638_v45, %v662_v61  ;;  %v792_v45 = vsub.f32 1.0, %v1694_v6  ;;  %v793_v6 = vsub.f32 1.0, %v1712_v13  ;;  %v795_v61 = vsub.f32 1.0, %v1688_v3 }
 0x1ca   : > { %701 = vrot.lane.b32.xlu0 %v678_v51, %s1520_s27  ;;  %v800_v22 = vmul.f32 %v792_v45, %v792_v45 }
 0x1cd   : > { %v654_v16 = vpop.permute.xlu0 %653 }
 0x1ce   : > { %v674_v62 = vmax.f32 %v634_v47, %v654_v16  ;;  %v833_v47 = vsub.f32 1.0, %v266_v41 }
 0x1d0   : > { %693 = vrot.lane.b32.xlu2 %v674_v62, %s1520_s27 }
 0x1d5   : > { %v660_v63 = vpop.permute.xlu0 %659 }
 0x1d6   : > { %v677_v1 = vmax.f32 %v637_v8, %v660_v63  ;;  %v1333_v8 = vpop.eup %1332  ;;  %v1224_v63 = vfloor.f32 %v1688_v3 }
 0x1d7   : > { %v848_v55 = vmul.f32 0.6931472, %v1333_v8  ;;  %v794_v8 = vsub.f32 1.0, %v1714_v14 }
 0x1d8   : > { %699 = vrot.lane.b32.xlu2 %v677_v1, %s1520_s27 }
 0x1d9   : > { %v863_v34 = vmul.f32 %v848_v55, %v823_v26  ;;  %v1219_v26 = vfloor.f32 %v1714_v14 }
 0x20a   : > { %v688_v59 = vpop.permute.xlu2 %687 }
 0x20b   : > { %v711_v2 = vmax.f32 %v671_v52, %v688_v59  ;;  %v1876_v59 = vld [vmem:[%s1668_s19 + $0x38] sm:$0xff] }
 0x20c   : > { %v838_v30 = vsub.f32 1.0, %v1876_v59 }
 0x20d   : > { %727 = vrot.lane.b32.xlu1 %v711_v2, %s1521_s5 }
 0x22a   : > { %v690_v9 = vpop.permute.xlu0 %689  ;;  %v694_v7 = vpop.permute.xlu2 %693 }
 0x22b   : > { %v1837_v18 = vmax.f32 %v672_v54, %v690_v9  ;;  %v692_v10 = vpop.permute.xlu1 %691  ;;  %v1839_v19 = vmax.f32 %v674_v62, %v694_v7  ;;  %v841_v54 = vadd.f32 1e-05, %v833_v47  ;;  %v1223_v62 = vceil.f32 %v1688_v3 }
 0x22c   : > { %v1841_v20 = vmax.f32 %v673_v56, %v692_v10  ;;  %v1214_v10 = vfloor.f32 %v1712_v13  ;;  %v817_v3 = vmul.f32 %v266_v41, %v266_v41 }
 0x22d   : > { %729 = vrot.lane.b32.xlu2 %v1837_v18, %s1521_s5  ;;  %733 = vrot.lane.b32.xlu1 %v1839_v19, %s1521_s5  ;;  %1336 = vlog2.f32 %v841_v54 }
 0x22e   : > { %731 = vrot.lane.b32.xlu0 %v1841_v20, %s1521_s5 }
 0x232   : > { %v700_v24 = vpop.permute.xlu2 %699 }
 0x233   : > { %v698_v27 = vpop.permute.xlu1 %697  ;;  %v1846_v33 = vmax.f32 %v677_v1, %v700_v24  ;;  %v1213_v1 = vceil.f32 %v1712_v13  ;;  %v801_v24 = vmul.f32 %v793_v6, %v793_v6  ;;  %v1218_v6 = vceil.f32 %v1714_v14 }
 0x234   : > { %v696_v31 = vpop.permute.xlu0 %695  ;;  %v1848_v23 = vmax.f32 %v676_v58, %v698_v27  ;;  %v816_v58 = vmul.f32 %v265_v35, %v265_v35 }
 0x235   : > { %v1850_v25 = vmax.f32 %v675_v60, %v696_v31  ;;  %739 = vrot.lane.b32.xlu1 %v1846_v33, %s1521_s5  ;;  %v268_v60 = vld [vmem:[%s1668_s19 + $0x20] sm:$0xff]  ;;  %v1885_v37 = vsel %vm1212_vm11, %v1213_v1, %v1214_v10  ;;  %v809_v13 = vmul.f32 %v801_v24, %v801_v24 }
 0x236   : > { %737 = vrot.lane.b32.xlu0 %v1848_v23, %s1521_s5  ;;  %v835_v27 = vsub.f32 1.0, %v268_v60  ;;  %v819_v40 = vmul.f32 %v268_v60, %v268_v60  ;;  %v1238_v60 = vceil.f32 %v1710_v12 }
 0x237   : > { %735 = vrot.lane.b32.xlu2 %v1850_v25, %s1521_s5  ;;  %v825_v50 = vmul.f32 %v817_v3, %v809_v13 }
 0x238   : > { %v843_v15 = vadd.f32 1e-05, %v835_v27 }
 0x23a   : > { %1338 = vlog2.f32 %v843_v15 }
 0x23c   : > { %v702_v28 = vpop.permute.xlu0 %701 }
 0x23d   : > { %v1855_v29 = vmax.f32 %v678_v51, %v702_v28  ;;  %v808_v51 = vmul.f32 %v800_v22, %v800_v22  ;;  %v803_v28 = vmul.f32 %v795_v61, %v795_v61  ;;  %v1239_v61 = vfloor.f32 %v1710_v12 }
 0x23f   : > { %741 = vrot.lane.b32.xlu2 %v1855_v29, %s1521_s5  ;;  %v824_v35 = vmul.f32 %v816_v58, %v808_v51  ;;  %v811_v45 = vmul.f32 %v803_v28, %v803_v28  ;;  %v1904_v58 = vld [vmem:[%s1668_s19 + $0x28] sm:$0xff]  ;;  %v270_v28 = vld [vmem:[%s1668_s19 + $0x30] sm:$0xff]  ;;  %s968_s19 = sshll.u32 %s964_s6, 4  ;;  %s969_s19 = int_to_ptr.hbm [resolvable:$true] %s968_s19 }
 0x240   : > { %s1422_s27 = sshra.s32 %s969_s19, 4  ;;  %s1423_s27 = int_to_ptr.hbm [resolvable:$true] %s1422_s27 }
 0x241   : > { %v1895_v54 = vmul.f32 %v819_v40, %v811_v45  ;;  %v837_v40 = vsub.f32 1.0, %v270_v28  ;;  %s1424_s5 = scalar_lea.hbm %s1423_s27, 8  ;;  %p1429_p10 = scmp.lt.s32.totalorder %s1423_s27, %s2054_s2 }
 0x242   : > { %p1425_p6 = scmp.ne.s32.totalorder %s1423_s27, %s1424_s5  ;;  %p1430_p2 = scmp.lt.s32.totalorder %s1428_s28, %s1424_s5 }
 0x244   : > { %p1426_p13 = pnand %p1425_p6, %p1592_p11  ;;  %p1431_p9 = por %p1430_p2, %p1429_p10 }
 0x246   : > { %p1427_p3 = pneg %p1426_p13 }
 0x248   : > { %p1432_p0 = pnand %p1431_p9, %p1427_p3 }
 0x27f   : > { %v728_v42 = vpop.permute.xlu1 %727 }
 0x280   : > { %v751_v46 = vmax.f32 %v711_v2, %v728_v42  ;;  %v1335_v2 = vpop.eup %1334 }
 0x281   : > { %v850_v36 = vmul.f32 0.6931472, %v1335_v2  ;;  %v1337_v42 = vpop.eup %1336 }
 0x282   : > { %vm1162_vm9 = vcmp.lt.s32.totalorder %v751_v46, 0  ;;  %v1163_v17 = vceil.f32 %v751_v46  ;;  %v1164_v5 = vfloor.f32 %v751_v46  ;;  %v846_v46 = vadd.f32 1e-05, %v838_v30 }
 0x283   : > { %v864_v57 = vmul.f32 %v850_v36, %v824_v35  ;;  %v852_v22 = vmul.f32 0.6931472, %v1337_v42  ;;  %v1233_v35 = vceil.f32 %v1708_v11  ;;  %v1234_v36 = vfloor.f32 %v1708_v11 }
 0x284   : > { %v1165_v52 = vsel %vm1162_vm9, %v1163_v17, %v1164_v5  ;;  %v1216_v5 = vcvt.f32.s32 %v1885_v37  ;;  %1340 = vlog2.f32 %v846_v46  ;;  %v796_v46 = vsub.f32 1.0, %v1690_v4 }
 0x285   : > { %v1166_v56 = vcvt.f32.s32 %v1165_v52  ;;  %v1918_v24 = vmul.f32 %v852_v22, %v825_v50 }
 0x287   : > { %v730_v16 = vpop.permute.xlu2 %729  ;;  %v775_v9 = vsub.s32 %v1166_v56, %v1206_v53  ;;  %v842_v53 = vadd.f32 1e-05, %v834_v44 }
 0x288   : > { %v752_v7 = vmax.f32 %v1837_v18, %v730_v16  ;;  %v1883_v18 = vsel %vm1222_vm10, %v1223_v62, %v1224_v63  ;;  %v1228_v16 = vceil.f32 %v1690_v4  ;;  %v1229_v62 = vfloor.f32 %v1690_v4  ;;  %v1339_v63 = vpop.eup %1338 }
 0x289   : > { %vm783_vm13 = vcmp.eq.s32.totalorder %v775_v9, 1  ;;  %v1226_v48 = vcvt.f32.s32 %v1883_v18  ;;  %1342 = vlog2.f32 %v842_v53  ;;  %v821_v18 = vmul.f32 %v270_v28, %v270_v28 }
 0x28a   : > { %vm1167_vm12 = vcmp.lt.s32.totalorder %v752_v7, 0  ;;  %v1168_v31 = vceil.f32 %v752_v7  ;;  %v1169_v21 = vfloor.f32 %v752_v7  ;;  %v871_v47 = vsel %vm783_vm13, %v863_v34, 0.0  ;;  %v1916_v10 = vpop.eup %1340 }
 0x28b   : > { %v1125_v49 = vsel %vm783_vm13, 1.0, %v1516_v0  ;;  %v880_v52 = vsel %vm879_vm14, %v871_v47, 0.0  ;;  %v836_v7 = vsub.f32 1.0, %v1904_v58  ;;  %v1220_v34 = vsel %vm1217_vm0, %v1218_v6, %v1219_v26 }
 0x28c   : > { %v1170_v39 = vsel %vm1167_vm12, %v1168_v31, %v1169_v21  ;;  %v920_v55 = vsel %vm879_vm14, %v1125_v49, 0.0  ;;  %v818_v31 = vmul.f32 %v267_v38, %v267_v38  ;;  %v1934_v38 = vsel %vm1237_vm1, %v1238_v60, %v1239_v61 }
 0x28d   : > { %v1171_v43 = vcvt.f32.s32 %v1170_v39  ;;  %v1930_v39 = vsel %vm1227_vm2, %v1228_v16, %v1229_v62  ;;  %v844_v15 = vadd.f32 1e-05, %v836_v7  ;;  %v1221_v44 = vcvt.f32.s32 %v1220_v34 }
 0x28e   : > { %v804_v26 = vmul.f32 %v796_v46, %v796_v46  ;;  %v856_v60 = vmul.f32 0.6931472, %v1339_v63  ;;  %v820_v62 = vmul.f32 %v1904_v58, %v1904_v58 }
 0x28f   : > { %v776_v41 = vsub.s32 %v1171_v43, %v1211_v32  ;;  %v802_v32 = vmul.f32 %v794_v8, %v794_v8  ;;  %v1343_v42 = vpop.eup %1342  ;;  %v1946_v8 = vsel %vm1232_vm4, %v1233_v35, %v1234_v36  ;;  %1344 = vlog2.f32 %v844_v15 }
 0x290   : > { %v854_v50 = vmul.f32 0.6931472, %v1343_v42  ;;  %v867_v36 = vmul.f32 %v856_v60, %v1895_v54 }
 0x291   : > { %v736_v17 = vpop.permute.xlu2 %735  ;;  %vm784_vm15 = vcmp.eq.s32.totalorder %v776_v41, 1  ;;  %v810_v27 = vmul.f32 %v802_v32, %v802_v32 }
 0x292   : > { %v755_v56 = vmax.f32 %v1850_v25, %v736_v17  ;;  %v798_v25 = vsub.f32 1.0, %v1710_v12  ;;  %v872_v51 = vsel %vm784_vm15, %v864_v57, 0.0  ;;  %v1126_v1 = vsel %vm784_vm15, 1.0, %v1516_v0 }
 0x293   : > { %v881_v21 = vsel %vm879_vm14, %v872_v51, 0.0  ;;  %v921_v3 = vsel %vm879_vm14, %v1126_v1, 0.0  ;;  %v826_v45 = vmul.f32 %v818_v31, %v810_v27  ;;  %v1231_v57 = vcvt.f32.s32 %v1930_v39 }
 0x294   : > { %v1183_v2 = vceil.f32 %v755_v56  ;;  %v1184_v9 = vfloor.f32 %v755_v56  ;;  %vm1182_vm3 = vcmp.lt.s32.totalorder %v755_v56, 0  ;;  %v806_v13 = vmul.f32 %v798_v25, %v798_v25 }
 0x295   : > { %v1938_v47 = vadd.f32 %v881_v21, %v880_v52  ;;  %v1940_v49 = vadd.f32 %v921_v3, %v920_v55  ;;  %v797_v12 = vsub.f32 1.0, %v1708_v11  ;;  %v1241_v17 = vcvt.f32.s32 %v1934_v38 }
 0x296   : > { %v1185_v14 = vsel %vm1182_vm3, %v1183_v2, %v1184_v9  ;;  %v814_v22 = vmul.f32 %v806_v13, %v806_v13  ;;  %v845_v52 = vadd.f32 1e-05, %v837_v40  ;;  %v812_v2 = vmul.f32 %v804_v26, %v804_v26 }
 0x297   : > { %v1186_v41 = vcvt.f32.s32 %v1185_v14  ;;  %v805_v32 = vmul.f32 %v797_v12, %v797_v12  ;;  %v866_v27 = vmul.f32 %v854_v50, %v826_v45  ;;  %v1236_v31 = vcvt.f32.s32 %v1946_v8 }
 0x298   : > { %1346 = vlog2.f32 %v845_v52  ;;  %v828_v13 = vmul.f32 %v820_v62, %v812_v2 }
 0x299   : > { %v742_v30 = vpop.permute.xlu2 %741  ;;  %v1955_v61 = vsub.s32 %v1186_v41, %v1226_v48  ;;  %v813_v7 = vmul.f32 %v805_v32, %v805_v32 }
 0x29a   : > { %v758_v43 = vmax.f32 %v1855_v29, %v742_v30  ;;  %v822_v29 = vmul.f32 %v1876_v59, %v1876_v59  ;;  %v862_v30 = vmul.f32 0.6931472, %v1916_v10 }
 0x29b   : > { %vm787_vm8 = vcmp.eq.s32.totalorder %v1955_v61, 1  ;;  %v829_v15 = vmul.f32 %v821_v18, %v813_v7 }
 0x29c   : > { %v1198_v53 = vceil.f32 %v758_v43  ;;  %v1199_v55 = vfloor.f32 %v758_v43  ;;  %vm1197_vm5 = vcmp.lt.s32.totalorder %v758_v43, 0  ;;  %v830_v58 = vmul.f32 %v822_v29, %v814_v22 }
 0x29e   : > { %v1200_v1 = vsel %vm1197_vm5, %v1198_v53, %v1199_v55  ;;  %v870_v60 = vmul.f32 %v862_v30, %v830_v58 }
 0x29f   : > { %v734_v4 = vpop.permute.xlu1 %733  ;;  %v1201_v28 = vcvt.f32.s32 %v1200_v1 }
 0x2a0   : > { %v732_v56 = vpop.permute.xlu0 %731  ;;  %v754_v6 = vmax.f32 %v1839_v19, %v734_v4  ;;  %v1129_v4 = vsel %vm787_vm8, 1.0, %v1516_v0 }
 0x2a1   : > { %v753_v11 = vmax.f32 %v1841_v20, %v732_v56  ;;  %v1345_v20 = vpop.eup %1344  ;;  %v927_v32 = vsel %vm879_vm14, %v1129_v4, 0.0 }
 0x2a2   : > { %vm1177_vm6 = vcmp.lt.s32.totalorder %v754_v6, 0  ;;  %v1178_v59 = vceil.f32 %v754_v6  ;;  %v1179_v25 = vfloor.f32 %v754_v6  ;;  %v858_v10 = vmul.f32 0.6931472, %v1345_v20  ;;  %v1347_v42 = vpop.eup %1346 }
 0x2a3   : > { %vm1172_vm7 = vcmp.lt.s32.totalorder %v753_v11, 0  ;;  %v1173_v51 = vceil.f32 %v753_v11  ;;  %v1174_v16 = vfloor.f32 %v753_v11  ;;  %v860_v8 = vmul.f32 0.6931472, %v1347_v42 }
 0x2a4   : > { %v1180_v19 = vsel %vm1177_vm6, %v1178_v59, %v1179_v25  ;;  %v868_v6 = vmul.f32 %v858_v10, %v828_v13 }
 0x2a5   : > { %v1175_v9 = vsel %vm1172_vm7, %v1173_v51, %v1174_v16  ;;  %v1181_v63 = vcvt.f32.s32 %v1180_v19 }
 0x2a6   : > { %v1176_v48 = vcvt.f32.s32 %v1175_v9 }
 0x2a7   : > { %v778_v34 = vsub.s32 %v1181_v63, %v1221_v44  ;;  %v740_v35 = vpop.permute.xlu1 %739 }
 0x2a8   : > { %v777_v21 = vsub.s32 %v1176_v48, %v1216_v5  ;;  %v738_v3 = vpop.permute.xlu0 %737  ;;  %v757_v14 = vmax.f32 %v1846_v33, %v740_v35 }
 0x2a9   : > { %vm786_vm9 = vcmp.eq.s32.totalorder %v778_v34, 1  ;;  %v756_v40 = vmax.f32 %v1848_v23, %v738_v3 }
 0x2aa   : > { %vm785_vm10 = vcmp.eq.s32.totalorder %v777_v21, 1  ;;  %v874_v43 = vsel %vm786_vm9, %v866_v27, 0.0  ;;  %v1128_v44 = vsel %vm786_vm9, 1.0, %v1516_v0  ;;  %vm1192_vm11 = vcmp.lt.s32.totalorder %v757_v14, 0 }
 0x2ab   : > { %v873_v54 = vsel %vm785_vm10, %v1918_v24, 0.0  ;;  %v1127_v37 = vsel %vm785_vm10, 1.0, %v1516_v0  ;;  %vm1187_vm12 = vcmp.lt.s32.totalorder %v756_v40, 0  ;;  %v1188_v5 = vceil.f32 %v756_v40 }
 0x2ac   : > { %v883_v33 = vsel %vm879_vm14, %v873_v54, 0.0  ;;  %v923_v45 = vsel %vm879_vm14, %v1127_v37, 0.0  ;;  %v1189_v46 = vfloor.f32 %v756_v40  ;;  %v1193_v23 = vceil.f32 %v757_v14 }
 0x2ad   : > { %v1194_v12 = vfloor.f32 %v757_v14  ;;  %v924_v41 = vadd.f32 %v923_v45, %v1940_v49  ;;  %v884_v29 = vadd.f32 %v883_v33, %v1938_v47  ;;  %v782_v24 = vsub.s32 %v1201_v28, %v1241_v17 }
 0x2ae   : > { %v1190_v50 = vsel %vm1187_vm12, %v1188_v5, %v1189_v46  ;;  %v925_v22 = vsel %vm879_vm14, %v1128_v44, 0.0  ;;  %v885_v56 = vsel %vm879_vm14, %v874_v43, 0.0  ;;  %v875_v47 = vsel %vm787_vm8, %v867_v36, 0.0 }
 0x2af   : > { %v1191_v52 = vcvt.f32.s32 %v1190_v50  ;;  %v1195_v53 = vsel %vm1192_vm11, %v1193_v23, %v1194_v12  ;;  %v926_v55 = vadd.f32 %v925_v22, %v924_v41  ;;  %v886_v26 = vadd.f32 %v885_v56, %v884_v29 }
 0x2b0   : > { %v1196_v49 = vcvt.f32.s32 %v1195_v53  ;;  %v869_v17 = vmul.f32 %v860_v8, %v829_v15  ;;  %vm790_vm15 = vcmp.eq.s32.totalorder %v782_v24, 1  ;;  %v887_v25 = vsel %vm879_vm14, %v875_v47, 0.0 }
 0x2b1   : > { %v780_v38 = vsub.s32 %v1191_v52, %v1231_v57  ;;  %v928_v59 = vadd.f32 %v927_v32, %v926_v55  ;;  %v888_v61 = vadd.f32 %v887_v25, %v886_v26  ;;  %v1132_v1 = vsel %vm790_vm15, 1.0, %v1516_v0 }
 0x2b2   : > { %v781_v11 = vsub.s32 %v1196_v49, %v1236_v31  ;;  %v878_v20 = vsel %vm790_vm15, %v870_v60, 0.0  ;;  %v933_v27 = vsel %vm879_vm14, %v1132_v1, 0.0 }
 0x2b3   : > { %vm788_vm13 = vcmp.eq.s32.totalorder %v780_v38, 1  ;;  %v893_v31 = vsel %vm879_vm14, %v878_v20, 0.0 }
 0x2b4   : > { %vm789_vm0 = vcmp.eq.s32.totalorder %v781_v11, 1  ;;  %v1130_v51 = vsel %vm788_vm13, 1.0, %v1516_v0  ;;  %v876_v16 = vsel %vm788_vm13, %v868_v6, 0.0 }
 0x2b5   : > { %v1131_v62 = vsel %vm789_vm0, 1.0, %v1516_v0  ;;  %v929_v39 = vsel %vm879_vm14, %v1130_v51, 0.0  ;;  %v877_v57 = vsel %vm789_vm0, %v869_v17, 0.0  ;;  %v889_v19 = vsel %vm879_vm14, %v876_v16, 0.0 }
 0x2b6   : > { %v930_v2 = vadd.f32 %v929_v39, %v928_v59  ;;  %v890_v9 = vadd.f32 %v889_v19, %v888_v61  ;;  %v931_v63 = vsel %vm879_vm14, %v1131_v62, 0.0  ;;  %v891_v7 = vsel %vm879_vm14, %v877_v57, 0.0 }
 0x2b8   : > { %v932_v18 = vadd.f32 %v931_v63, %v930_v2  ;;  %v892_v48 = vadd.f32 %v891_v7, %v890_v9 }
 0x2ba   : > { %v934_v30 = vadd.f32 %v933_v27, %v932_v18  ;;  %v894_v34 = vadd.f32 %v893_v31, %v892_v48 }
 0x2bc   : > { %935 = vadd.xlane.f32.xlu1 %v934_v30  ;;  %895 = vadd.xlane.f32.xlu0 %v894_v34 }
 0x32f   : > { %v936_v35 = vpop.xlane.xlu1 %935  ;;  %v896_v0 = vpop.xlane.xlu0 %895 }
 0x330   : > { %v937_v58 = vrot.slane %v936_v35, 4  ;;  %v897_v36 = vrot.slane %v896_v0, 4 }
 0x332   : > { %v938_v21 = vadd.f32 %v937_v58, %v936_v35  ;;  %v898_v3 = vadd.f32 %v897_v36, %v896_v0 }
 0x334   : > { %v939_v14 = vrot.slane %v938_v21, 2  ;;  %v899_v28 = vrot.slane %v898_v3, 2 }
 0x336   : > { %v940_v13 = vadd.f32 %v939_v14, %v938_v21  ;;  %v900_v40 = vadd.f32 %v899_v28, %v898_v3 }
 0x338   : > { %v901_v15 = vrot.slane %v900_v40, 1  ;;  %v941_v10 = vrot.slane %v940_v13, 1 }
 0x33a   : > { %v902_v42 = vadd.f32 %v901_v15, %v900_v40  ;;  %v942_v43 = vadd.f32 %v941_v10, %v940_v13 }
 0x33c   : > { %1242 = vpush %v902_v42 }
 0x33d   : > { %1244 = vpush %v942_v43 }
 0x36d   : > { %s1243_s16 = spop %1242 }
 0x36e   : > { %v944_v44 = vstv %s1243_s16  ;;  %s1245_s20 = spop %1244 }
 0x36f   : > { %945 = vst [vmem:[%s238_s8] sm:$0xff] %v944_v44  ;;  %v946_v54 = vstv %s1245_s20 }
 0x370   : > { %947 = vst [vmem:[%s245_s26] sm:$0xff] %v946_v54 }
 0x371   : > { %1435 = shalt.err (!%p1432_p0)
}
 0x372   : > { %1250 = dma.vmem_to_hbm [thread:$0]  (%p1592_p11), %s967_s30, 128, %s969_s19, %s949_s22  }
 0x373   : > { %s954_s26 = scalar_lea.sflag [#allocation10], %s1658_s10  ;;  %s1450_s11 = sshra.s32 %s2007_s23, 4  ;;  %s1451_s11 = int_to_ptr.hbm [resolvable:$true] %s1450_s11 }
 0x374   : > { %s1452_s0 = scalar_lea.hbm %s1451_s11, 8  ;;  %s1456_s16 = scalar_lea.hbm %s2055_s3, 16 }
 0x375   : > { %p1453_p1 = scmp.ne.s32.totalorder %s1451_s11, %s1452_s0  ;;  %p1457_p5 = scmp.lt.s32.totalorder %s1451_s11, %s2055_s3 }
 0x376   : > { %p1458_p8 = scmp.lt.s32.totalorder %s1456_s16, %s1452_s0 }
 0x377   : > { %p1454_p4 = pnand %p1453_p1, %p1592_p11 }
 0x378   : > { %p1459_p6 = por %p1458_p8, %p1457_p5 }
 0x379   : > { %p1455_p7 = pneg %p1454_p4 }
 0x37b   : > { %p1460_p13 = pnand %p1459_p6, %p1455_p7 }
 0x37d   : > { %1463 = shalt.err (!%p1460_p13)
}
 0x37e   : > { %1251 = dma.vmem_to_hbm [thread:$0]  (%p1592_p11), %s2005_s4, 128, %s2007_s23, %s954_s26  }
 0x37f PF: > { %s994_s10 = sand.u32 1, %s1498_s12   ;;  %p2064_p3 = scmp.ge.s32.totalorder %s1510_s15, 2 }
 0x380   : > { %s995_s30 = scalar_lea.sflag [#allocation5], %s994_s10 }
 0x381   : > { %p1262_p10 = pnand %p2064_p3, %p1596_p12 }
 0x383   : > { %p1263_p2 = pneg %p1262_p10 }
 0x385   : > { %1489 = dma.done.wait (%p1263_p2), %s995_s30, 128  }
 0x386   : > { %1491 = vsyncadd (%p1263_p2), %s995_s30, 4294967168  ;;  %s1005_s19 = scalar_lea.sflag [#allocation10], %s994_s10 }
 0x387   : > { %1493 = dma.done.wait (%p1263_p2), %s1005_s19, 128  }
 0x388   : > { %1495 = vsyncadd (%p1263_p2), %s1005_s19, 4294967168  ;;  %p23_p11 = scmp.ge.s32.totalorder %s1567_s18, 4   ;;  %s2065_s12 = smov %s1502_s13 }
 0x389   : > { %s2066_s13 = smov %s1506_s14  ;;  %s2067_s14 = smov %s1579_s21 }
 0x38a   : > { %s2068_s15 = smov %s1567_s18  ;;  %25 = sbr.rel (!%p23_p11) target bundleno = 11 (0xb), region = 103 }
 0x38f   :  { %1011 = vsyncpa [#allocation4], 1 }
 0x390   :  { %1013 = vsyncpa [#allocation4 + $0x1], 1 }
 0x391   :  { %1014 = vsyncpa [#allocation7], 1 }
 0x392   :  { %1016 = vsyncpa [#allocation7 + $0x1], 1 }
 0x393   :  { %1017 = vsyncpa [#allocation5], 1 }
 0x394   :  { %1019 = vsyncpa [#allocation5 + $0x1], 1 }
 0x395   :  { %1020 = vsyncpa [#allocation10], 1 }
 0x396   :  { %1022 = vsyncpa [#allocation10 + $0x1], 1 }

</bundles_post_ra>
